<compile_context>
chip_gen: v7x
topology: tpu7x:2x2x1
jax: 0.10.0
libtpu: 0.0.40
codegen_flags: <defaults>
</compile_context>

<pallas_src>
import jax
import jax.numpy as jnp
from jax import lax
from jax.experimental import pallas as pl
from jax.experimental.pallas import tpu as pltpu


# --------------------------------------------------------------------------- #
# generation-aware sizing helpers
# --------------------------------------------------------------------------- #
def _vmem_capacity_bytes() -> int:
    try:
        info = pltpu.get_tpu_info()
        cap = int(getattr(info, "vmem_capacity_bytes", 0))
        if cap > 0:
            return cap
    except Exception:
        pass
    return 64 << 20  # conservative default (v7x per-core VMEM)


def _num_tensorcores_per_chip() -> int:
    # v7x has 2 TensorCores per chip; v5e/v6e have 1.
    try:
        kind = jax.devices()[0].device_kind.lower()
        if "v7" in kind:
            return 2
    except Exception:
        pass
    return 1


def _pick_tile_j(wd: int, d_in1: int, out_blk: int, batch_hint: int,
                 w_itemsize: int, budget_bytes: int) -> int:
    """Largest exact divisor of wd whose double-buffered weight + A tiles fit
    in budget_bytes; prefer >= 2 j-steps so the DMA pipeline can overlap."""
    divisors = sorted((t for t in range(1, wd + 1) if wd % t == 0), reverse=True)

    def fits(t: int) -> bool:
        w_blk = d_in1 * t * out_blk * w_itemsize       # bilinear weight tile
        a_blk = batch_hint * t * d_in1 * 2             # bf16 activation tile
        return 2 * (w_blk + a_blk) <= budget_bytes     # double-buffered

    for prefer_multi_step in (True, False):
        for t in divisors:
            if prefer_multi_step and t > max(wd // 2, 1):
                continue
            if fits(t):
                return t
    return 1


# --------------------------------------------------------------------------- #
# one-time parameter preparation (keep OUT of the per-call hot path)
# --------------------------------------------------------------------------- #
def prepare_entity_params(w_fc, b_fc, w_bil, b_bil, *, n_ob=None, tile_j=None):
    """Lay out the fc / bilinear parameters for the Pallas kernels.

    w_fc:  [768, out_dim]   b_fc: [out_dim]
    w_bil: [out_dim, 768, 100] (PyTorch nn.Bilinear layout)   b_bil: [out_dim]
    """
    d_in, d_fc_out = w_fc.shape
    out_dim, d_in1, wd = w_bil.shape
    assert d_in1 == d_fc_out, \
        "nn.Bilinear(in1_features) must equal TextEmbedding.fc out_dim"

    vmem_cap = _vmem_capacity_bytes()
    vmem_limit = int(vmem_cap * 3 // 4)

    if n_ob is None:
        n_ob = 2 if (_num_tensorcores_per_chip() >= 2 and out_dim % 256 == 0) else 1
    out_blk = out_dim // n_ob

    if tile_j is None:
        budget = int(0.8 * vmem_limit) - (1 << 20)  # headroom for acc/out/bias bufs
        tile_j = _pick_tile_j(wd, d_in1, out_blk, 8, 2, budget)

    # Bilinear weight: [OUT, D, WD] -> [WD*D, OUT] with j-major K (k = j*D + d),
    # stored bf16 (halves the dominant HBM stream; f32 accumulation on MXU).
    w_flat = jnp.transpose(w_bil, (2, 1, 0)).reshape(wd * d_in1, out_dim)
    w_flat = w_flat.astype(jnp.bfloat16)

    return dict(
        w_fc=w_fc.astype(jnp.bfloat16),
        b_fc=b_fc.reshape(1, d_fc_out).astype(jnp.float32),
        w_flat=w_flat,
        b_bil=b_bil.reshape(1, out_dim).astype(jnp.float32),
        d_in1=d_in1, wd=wd, out_dim=out_dim,
        n_ob=n_ob, out_blk=out_blk, tile_j=tile_j,
        vmem_limit=vmem_limit,
    )


# --------------------------------------------------------------------------- #
# kernel 1: TextEmbedding.fc applied to the [CLS] vector (emits bf16)
# --------------------------------------------------------------------------- #
def _fc_kernel(x_ref, w_ref, b_ref, o_ref):
    o_ref[...] = (jnp.dot(x_ref[...].astype(jnp.bfloat16), w_ref[...],
                          preferred_element_type=jnp.float32)
                  + b_ref[...]).astype(o_ref.dtype)


def text_fc_pallas(cls_emb, params):
    B, d_in = cls_emb.shape
    d_out = params["w_fc"].shape[1]
    return pl.pallas_call(
        _fc_kernel,
        out_shape=jax.ShapeDtypeStruct((B, d_out), jnp.bfloat16),
        grid_spec=pltpu.PrefetchScalarGridSpec(
            num_scalar_prefetch=0,
            grid=(1,),
            in_specs=[pl.BlockSpec((B, d_in), lambda i: (0, 0)),
                      pl.BlockSpec((d_in, d_out), lambda i: (0, 0)),
                      pl.BlockSpec((1, d_out), lambda i: (0, 0))],
            out_specs=pl.BlockSpec((B, d_out), lambda i: (0, 0)),
        ),
    )(cls_emb, params["w_fc"], params["b_fc"])


# --------------------------------------------------------------------------- #
# kernel 2: nn.Bilinear as one tiled matmul over K = WD * 768
# --------------------------------------------------------------------------- #
def _bilinear_matmul_kernel(a_ref, w_ref, b_ref, o_ref, acc_ref):
    """Grid = (out_block [parallel], k_tile [arbitrary, reduction])."""
    j = pl.program_id(1)

    @pl.when(j == 0)
    def _init():
        acc_ref[...] = jnp.zeros_like(acc_ref)

    acc_ref[...] += jnp.dot(a_ref[...], w_ref[...],
                            preferred_element_type=jnp.float32)

    @pl.when(j == pl.num_programs(1) - 1)
    def _finalize():
        o_ref[...] = (acc_ref[...] + b_ref[...]).astype(o_ref.dtype)


def bilinear_pallas(scaled_bf16, params):
    """scaled_bf16: [B, WD*D] bf16 with A[b, j*D+d] = wiki[b,j] * desc[b,d]."""
    B, K = scaled_bf16.shape
    d_in1, wd, out_dim = params["d_in1"], params["wd"], params["out_dim"]
    n_ob, out_blk, tile_j = params["n_ob"], params["out_blk"], params["tile_j"]
    assert K == wd * d_in1
    tile_k = tile_j * d_in1  # multiple of 128 since d_in1 is

    grid = (n_ob, wd // tile_j)
    flops = int(2 * B * K * out_dim)
    bytes_accessed = int(params["w_flat"].size * 2
                         + n_ob * scaled_bf16.size * 2
                         + out_dim * 4 + B * out_dim * 4)

    # TODO(synk): once tile_j is fixed per generation, sweep
    # pipeline_mode=pl.Buffered(3) on the weight BlockSpec (few-% prologue win).
    return pl.pallas_call(
        _bilinear_matmul_kernel,
        out_shape=jax.ShapeDtypeStruct((B, out_dim), jnp.float32),
        grid_spec=pltpu.PrefetchScalarGridSpec(
            num_scalar_prefetch=0,
            grid=grid,
            in_specs=[
                pl.BlockSpec((B, tile_k), lambda ob, j: (0, j)),        # scaled A
                pl.BlockSpec((tile_k, out_blk), lambda ob, j: (j, ob)),  # W (bf16)
                pl.BlockSpec((1, out_blk), lambda ob, j: (0, ob)),       # bias
            ],
            out_specs=pl.BlockSpec((B, out_blk), lambda ob, j: (0, ob)),
            scratch_shapes=[pltpu.VMEM((B, out_blk), jnp.float32)],      # accumulator
        ),
        compiler_params=pltpu.CompilerParams(
            # TODO(synk): on v7x, confirm with xprof that the 'parallel' ob axis
            # is sharded across both TensorCores; switch to pltpu.CORE_PARALLEL
            # if only one TC is busy.
            dimension_semantics=("parallel", "arbitrary"),
            vmem_limit_bytes=params["vmem_limit"]),
        cost_estimate=pl.CostEstimate(flops=flops, transcendentals=0,
                                      bytes_accessed=bytes_accessed),
    )(scaled_bf16, params["w_flat"], params["b_bil"])


# --------------------------------------------------------------------------- #
# forward
# --------------------------------------------------------------------------- #
def entity_embedding_forward(cls_emb, wiki, params, *, return_desc=False):
    """EntityEmbedding forward given the BERT [CLS] hidden state and wiki2vec."""
    B = cls_emb.shape[0]
    d_in1, wd = params["d_in1"], params["wd"]
    assert wiki.shape == (B, wd)

    desc = text_fc_pallas(cls_emb, params)                    # [B, d_in1] bf16
    # Fold wiki into desc (tiny: B*wd*d_in1 elems) so the bilinear becomes one
    # big tiled matmul over K = wd*d_in1; this replaces the old per-column
    # dot + VPU FMA loop and the lane-width-1 wiki BlockSpec.
    scaled = (wiki[:, :, None].astype(jnp.float32)
              * desc[:, None, :].astype(jnp.float32))
    scaled = scaled.reshape(B, wd * d_in1).astype(jnp.bfloat16)
    out = bilinear_pallas(scaled, params)                     # nn.Bilinear
    return (out, desc) if return_desc else out


# --------------------------------------------------------------------------- #
if __name__ == "__main__":
    B, SEQ, VOCAB = 2, 8, 50
    D_BERT = 256      # stand-in for the 768-dim BERT hidden size (scaled down)
    D_WIKI = 100      # wiki2vec embedding size, as in the module
    OUT_DIM = D_BERT  # forward only typechecks when out_dim == in1_features (768)

    key = jax.random.PRNGKey(0)
    keys = jax.random.split(key, 7)
    desc_input_ids = jax.random.randint(keys[0], (B, SEQ), 0, VOCAB)
    desc_attention_mask = jnp.ones((B, SEQ), dtype=jnp.int32)
    wiki2vec_embedding = jax.random.normal(keys[1], (B, D_WIKI), dtype=jnp.float32)

    tok_emb = jax.random.normal(keys[2], (VOCAB, D_BERT), jnp.float32) * 0.02
    w_fc = jax.random.normal(keys[3], (D_BERT, OUT_DIM), jnp.float32) * 0.05
    b_fc = jax.random.normal(keys[4], (OUT_DIM,), jnp.float32) * 0.05
    w_bil = jax.random.normal(keys[5], (OUT_DIM, D_BERT, D_WIKI), jnp.float32) * 0.02
    b_bil = jax.random.normal(keys[6], (OUT_DIM,), jnp.float32) * 0.02

    # TODO(synk): the pretrained BERT encoder (AutoModel.from_pretrained) has no
    # Pallas equivalent; stand-in = deterministic token-embedding lookup, take
    # position 0 ([CLS]) of the last hidden state. attention_mask is unused here.
    last_hidden = tok_emb[desc_input_ids]      # [B, SEQ, D_BERT]
    cls_emb = last_hidden[:, 0, :]             # [B, D_BERT]  == output[0][:, 0, :]
    _ = desc_attention_mask

    # One-time parameter layout (hoisted out of the per-call hot path).
    params = prepare_entity_params(w_fc, b_fc, w_bil, b_bil)

    out, desc = entity_embedding_forward(cls_emb, wiki2vec_embedding, params,
                                         return_desc=True)
    out = jax.block_until_ready(out)
    desc_f32 = desc.astype(jnp.float32)

    # fc reference matching the kernel's bf16 path.
    desc_ref = (jnp.dot(cls_emb.astype(jnp.bfloat16).astype(jnp.float32),
                        w_fc.astype(jnp.bfloat16).astype(jnp.float32),
                        precision=lax.Precision.HIGHEST)
                + b_fc).astype(jnp.bfloat16).astype(jnp.float32)
    assert jnp.allclose(desc_f32, desc_ref, atol=2e-3, rtol=2e-3), \
        float(jnp.max(jnp.abs(desc_f32 - desc_ref)))

    # bilinear reference matching the kernel's bf16 operand rounding.
    scaled_ref = (wiki2vec_embedding[:, :, None] * desc_f32[:, None, :])
    scaled_ref = scaled_ref.astype(jnp.bfloat16).astype(jnp.float32).reshape(B, -1)
    w_flat_ref = jnp.transpose(w_bil, (2, 1, 0)).reshape(D_WIKI * D_BERT, OUT_DIM)
    w_flat_ref = w_flat_ref.astype(jnp.bfloat16).astype(jnp.float32)
    ref = jnp.dot(scaled_ref, w_flat_ref, precision=lax.Precision.HIGHEST) + b_bil
    assert out.shape == (B, OUT_DIM) and out.dtype == jnp.float32
    assert jnp.allclose(out, ref, atol=2e-3, rtol=2e-3), \
        float(jnp.max(jnp.abs(out - ref)))

    # Semantic (full-f32, PyTorch-equivalent) reference; looser tolerance since
    # the kernel intentionally streams the bilinear weight/activation in bf16.
    desc_full = jnp.dot(cls_emb, w_fc, precision=lax.Precision.HIGHEST) + b_fc
    full_ref = jnp.einsum('bi,oij,bj->bo', desc_full, w_bil, wiki2vec_embedding,
                          precision=lax.Precision.HIGHEST) + b_bil
    assert jnp.allclose(out, full_ref, atol=2e-2, rtol=2e-2), \
        float(jnp.max(jnp.abs(out - full_ref)))

    print("KERNEL_OK")
</pallas_src>

<mosaic_0001>
module attributes {stable_mosaic.version = 11 : i64} {
  func.func @_fc_kernel(%arg0: i32, %arg1: memref<2x256xf32, #tpu.memory_space<vmem>>, %arg2: memref<256x256xbf16, #tpu.memory_space<vmem>>, %arg3: memref<1x256xf32, #tpu.memory_space<vmem>>, %arg4: memref<2x256xbf16, #tpu.memory_space<vmem>>) attributes {dimension_semantics = [#tpu.dimension_semantics<arbitrary>], iteration_bounds = array<i64: 1>, scalar_prefetch = 0 : i64, scratch_operands = 0 : i64, tpu.core_type = #tpu.core_type<tc>, window_params = [{pipeline_mode = #tpu.pipeline_mode<synchronous>, transform_indices = @transform_0, window_bounds = array<i64: 2, 256>}, {pipeline_mode = #tpu.pipeline_mode<synchronous>, transform_indices = @transform_1, window_bounds = array<i64: 256, 256>}, {pipeline_mode = #tpu.pipeline_mode<synchronous>, transform_indices = @transform_2, window_bounds = array<i64: 1, 256>}, {pipeline_mode = #tpu.pipeline_mode<synchronous>, transform_indices = @transform_3, window_bounds = array<i64: 2, 256>}]} {
    %c0 = arith.constant 0 : index
    %c0_0 = arith.constant 0 : index
    %0 = vector.load %arg1[%c0, %c0_0] : memref<2x256xf32, #tpu.memory_space<vmem>>, vector<2x256xf32>
    %1 = arith.truncf %0 : vector<2x256xf32> to vector<2x256xbf16>
    %c0_1 = arith.constant 0 : index
    %c0_2 = arith.constant 0 : index
    %2 = vector.load %arg2[%c0_1, %c0_2] : memref<256x256xbf16, #tpu.memory_space<vmem>>, vector<256x256xbf16>
    %cst = arith.constant dense<0.000000e+00> : vector<2x256xf32>
    %3 = tpu.matmul %1, %2, %cst {dimension_numbers = #tpu.dot_dimension_numbers<[1], [0], [0], [1], [0, 0, 1, 1], [], []>} : vector<2x256xbf16>, vector<256x256xbf16>, vector<2x256xf32> -> vector<2x256xf32>
    %c0_3 = arith.constant 0 : index
    %c0_4 = arith.constant 0 : index
    %4 = vector.load %arg3[%c0_3, %c0_4] : memref<1x256xf32, #tpu.memory_space<vmem>>, vector<1x256xf32>
    %5 = vector.broadcast %4 : vector<1x256xf32> to vector<2x256xf32>
    %6 = arith.addf %3, %5 : vector<2x256xf32>
    %7 = arith.truncf %6 : vector<2x256xf32> to vector<2x256xbf16>
    %c0_5 = arith.constant 0 : index
    %c0_6 = arith.constant 0 : index
    %8 = vector.load %arg4[%c0_5, %c0_6] : memref<2x256xbf16, #tpu.memory_space<vmem>>, vector<2x256xbf16>
    tpu.vector_store %arg4[%c0_5, %c0_6], %7 {strides = array<i32>} : memref<2x256xbf16, #tpu.memory_space<vmem>>, vector<2x256xbf16>,
    return
  }
  func.func @transform_0(%arg0: i32) -> (i32, i32) {
    %c0_i32 = arith.constant 0 : i32
    %c0_i32_0 = arith.constant 0 : i32
    %c0_i32_1 = arith.constant 0 : i32
    return %c0_i32, %c0_i32_0 : i32, i32
  }
  func.func @transform_1(%arg0: i32) -> (i32, i32) {
    %c0_i32 = arith.constant 0 : i32
    %c0_i32_0 = arith.constant 0 : i32
    %c0_i32_1 = arith.constant 0 : i32
    return %c0_i32, %c0_i32_0 : i32, i32
  }
  func.func @transform_2(%arg0: i32) -> (i32, i32) {
    %c0_i32 = arith.constant 0 : i32
    %c0_i32_0 = arith.constant 0 : i32
    %c0_i32_1 = arith.constant 0 : i32
    return %c0_i32, %c0_i32_0 : i32, i32
  }
  func.func @transform_3(%arg0: i32) -> (i32, i32) {
    %c0_i32 = arith.constant 0 : i32
    %c0_i32_0 = arith.constant 0 : i32
    %c0_i32_1 = arith.constant 0 : i32
    return %c0_i32, %c0_i32_0 : i32, i32
  }
}

</mosaic_0001>

<bundles_post_ra>
// kernel: tpu_custom_call.1
= control target key start
LH: loop header
LB: loop body
LE: loop exit
PB: predicated region body
PF: predicated region fallthrough
CT: control target
= control target key end

     0   :  { %8 = vsyncpa [#allocation3], 0  ;;  %s570_s0 = inlined_call_operand.hbm [shape: f32[2,256], index: 0, kind: input, shape index: {}]   ;;  %s571_s1 = inlined_call_operand.hbm [shape: bf16[256,256], index: 1, kind: input, shape index: {}]   ;;  %s572_s2 = inlined_call_operand.vmem [shape: f32[1,256], index: 2, kind: input, shape index: {}]   ;;  %s573_s3 = inlined_call_operand.hbm [shape: bf16[2,256], index: 3, kind: output, shape index: {}]  }
   0x1   :  { %9 = vsyncpa [#allocation6], 0 }
   0x2   :  { %10 = vsyncpa [#allocation4], 0  ;;  %s498_s12 = smov [#allocation2]   ;;  %s499_s14 = smov [#allocation5]  }
   0x3   :  { %s17_s13 = sshll.u32 %s498_s12, 4  ;;  %s26_s15 = sshll.u32 %s499_s14, 4  ;;  %s18_s13 = int_to_ptr.vmem [resolvable:$true] %s17_s13  ;;  %s524_s15 = int_to_ptr.vmem [resolvable:$true] %s26_s15 }
   0x4   :  { %s426_s18 = scalar_lea.hbm %s570_s0, 64 }
   0x5   :  { %p427_p0 = scmp.ne.s32.totalorder %s570_s0, %s426_s18  ;;  %p430_p1 = scmp.lt.u32.totalorder %s426_s18, %s570_s0 }
   0x7   :  { %p432_p2 = pnand %p430_p1, %p427_p0 }
   0x9   :  { %435 = shalt.err (!%p432_p2)
}
   0xa   :  { %s436_s23 = scalar_lea.vmem %s18_s13, 64  ;;  %p441_p4 = scmp.lt.s32.totalorder %s18_s13, %s18_s13 }
   0xb   :  { %p437_p3 = scmp.ne.s32.totalorder %s18_s13, %s436_s23  ;;  %p442_p5 = scmp.lt.s32.totalorder %s436_s23, %s436_s23 }
   0xd   :  { %p443_p6 = por %p442_p5, %p441_p4 }
   0xf   :  { %p444_p7 = pnand %p443_p6, %p437_p3 }
  0x11   :  { %447 = shalt.err (!%p444_p7)
}
  0x12   :  { %20 = dma.hbm_to_vmem [thread:$0]  %s570_s0, 64, %s18_s13, [#allocation3]  }
  0x13   :  { %s448_s28 = scalar_lea.hbm %s571_s1, 4096 }
  0x14   :  { %p449_p8 = scmp.ne.s32.totalorder %s571_s1, %s448_s28  ;;  %p452_p9 = scmp.lt.u32.totalorder %s448_s28, %s571_s1 }
  0x16   :  { %p454_p10 = pnand %p452_p9, %p449_p8 }
  0x18   :  { %457 = shalt.err (!%p454_p10)
}
  0x19   :  { %s458_s6 = scalar_lea.vmem %s524_s15, 4096  ;;  %p463_p12 = scmp.lt.s32.totalorder %s524_s15, %s524_s15 }
  0x1a   :  { %p459_p11 = scmp.ne.s32.totalorder %s524_s15, %s458_s6  ;;  %p464_p13 = scmp.lt.s32.totalorder %s458_s6, %s458_s6 }
  0x1c   :  { %p465_p0 = por %p464_p13, %p463_p12 }
  0x1e   :  { %p466_p1 = pnand %p465_p0, %p459_p11 }
  0x20   :  { %469 = shalt.err (!%p466_p1)
}
  0x21   :  { %s500_s0 = smov 128   ;;  %s501_s7 = smov 8  }
  0x22   :  { %32 = dma.hbm_to_vmem [thread:$0]  %s571_s1, 4096, %s524_s15, [#allocation6], %s500_s0, %s500_s0, %s501_s7  }
  0x23   :  { %492 = dma.done.wait [#allocation3], 64  }
  0x24   :  { %493 = vsyncadd [#allocation3], 4294967232 }
  0x25   :  { %494 = dma.done.wait [#allocation6], 4096  }
  0x26   :  { %495 = vsyncadd [#allocation6], 4294963200  ;;  %v378_v0 = vld [vmem:[#allocation5 + $0x4] ss:$8 sps:$4 sm:$0xff]   ;;  %v380_v1 = vld [vmem:[#allocation5] ss:$8 sps:$4 sm:$0xff]   ;;  %v89_v36 = vlaneseq }
  0x27   :  { %259 = vmatprep.subr.bf16.mxu0 %v378_v0  ;;  %v381_v2 = vld [vmem:[#allocation5 + $0x14] ss:$8 sps:$4 sm:$0xff]   ;;  %v383_v3 = vld [vmem:[#allocation5 + $0x10] ss:$8 sps:$4 sm:$0xff]   ;;  %v384_v4 = vld [vmem:[#allocation5 + $0x24] ss:$8 sps:$4 sm:$0xff]  }
  0x28   :  { %260 = vmatpush1.bf16.msra.mxu0 %v380_v1  ;;  %v386_v5 = vld [vmem:[#allocation5 + $0x20] ss:$8 sps:$4 sm:$0xff]   ;;  %v387_v6 = vld [vmem:[#allocation5 + $0x34] ss:$8 sps:$4 sm:$0xff]   ;;  %v389_v7 = vld [vmem:[#allocation5 + $0x30] ss:$8 sps:$4 sm:$0xff]  }
  0x29   :  { %261 = vmatprep.subr.bf16.mxu0 %v381_v2  ;;  %v390_v8 = vld [vmem:[#allocation5 + $0x44] ss:$8 sps:$4 sm:$0xff]   ;;  %v392_v9 = vld [vmem:[#allocation5 + $0x40] ss:$8 sps:$4 sm:$0xff]   ;;  %v393_v10 = vld [vmem:[#allocation5 + $0x54] ss:$8 sps:$4 sm:$0xff]  }
  0x2a   :  { %v395_v11 = vld [vmem:[#allocation5 + $0x50] ss:$8 sps:$4 sm:$0xff]   ;;  %v396_v12 = vld [vmem:[#allocation5 + $0x64] ss:$8 sps:$4 sm:$0xff]   ;;  %v398_v15 = vld [vmem:[#allocation5 + $0x60] ss:$8 sps:$4 sm:$0xff]  }
  0x2b   :  { %v337_v13 = vld.sshfl [vmem:[#allocation2] sm:$0x33 pattern:$0x76325410]  ;;  %v401_v18 = vld [vmem:[#allocation5 + $0x70] ss:$8 sps:$4 sm:$0xff]  }
  0x2c   :  { %262 = vmatpush1.bf16.msra.mxu0 %v383_v3  ;;  %v50_v14 = vcombine.high %v337_v13, %v337_v13  ;;  %v399_v16 = vld [vmem:[#allocation5 + $0x74] ss:$8 sps:$4 sm:$0xff]   ;;  %v402_v19 = vld [vmem:[#allocation5 + $0x84] ss:$8 sps:$4 sm:$0xff]   ;;  %v404_v20 = vld [vmem:[#allocation5 + $0x80] ss:$8 sps:$4 sm:$0xff]   ;;  %v53_v35 = vpack.c.bf16 %v337_v13, %v337_v13 }
  0x2d   :  { %263 = vmatprep.subr.bf16.mxu0 %v384_v4  ;;  %v405_v21 = vld [vmem:[#allocation5 + $0x94] ss:$8 sps:$4 sm:$0xff]   ;;  %v407_v22 = vld [vmem:[#allocation5 + $0x90] ss:$8 sps:$4 sm:$0xff]   ;;  %v408_v23 = vld [vmem:[#allocation5 + $0xa4] ss:$8 sps:$4 sm:$0xff]  }
  0x2e   :  { %v54_v17 = vpack.c.bf16 %v50_v14, %v50_v14  ;;  %v410_v24 = vld [vmem:[#allocation5 + $0xa0] ss:$8 sps:$4 sm:$0xff]   ;;  %v411_v25 = vld [vmem:[#allocation5 + $0xb4] ss:$8 sps:$4 sm:$0xff]   ;;  %v413_v26 = vld [vmem:[#allocation5 + $0xb0] ss:$8 sps:$4 sm:$0xff]  }
  0x2f   :  { %v414_v27 = vld [vmem:[#allocation5 + $0xc4] ss:$8 sps:$4 sm:$0xff]   ;;  %v416_v28 = vld [vmem:[#allocation5 + $0xc0] ss:$8 sps:$4 sm:$0xff]   ;;  %v417_v29 = vld [vmem:[#allocation5 + $0xd4] ss:$8 sps:$4 sm:$0xff]  }
  0x30   :  { %264 = vmatpush1.bf16.msra.mxu0 %v386_v5  ;;  %291 = vmatprep.mubr.bf16.mxu0 %v54_v17  ;;  %v419_v30 = vld [vmem:[#allocation5 + $0xd0] ss:$8 sps:$4 sm:$0xff]   ;;  %v420_v31 = vld [vmem:[#allocation5 + $0xe4] ss:$8 sps:$4 sm:$0xff]   ;;  %v422_v32 = vld [vmem:[#allocation5 + $0xe0] ss:$8 sps:$4 sm:$0xff]  }
  0x31   :  { %265 = vmatprep.subr.bf16.mxu0 %v387_v6  ;;  %v423_v33 = vld [vmem:[#allocation5 + $0xf4] ss:$8 sps:$4 sm:$0xff]   ;;  %v425_v34 = vld [vmem:[#allocation5 + $0xf0] ss:$8 sps:$4 sm:$0xff]   ;;  %v90_v37 = vshrl.u32 %v89_v36, 7  ;;  %s503_s11 = smov [#allocation7]  }
  0x32   :  { %v87_v39 = vld [vmem:[%s572_s2] sm:$0x3]  ;;  %v502_v41 = vmov 1966171168   ;;  %s327_s12 = sshll.u32 %s503_s11, 4  ;;  %s328_s12 = int_to_ptr.vmem [resolvable:$true] %s327_s12 }
  0x33   :  { %v91_v38 = vsub.s32 0, %v90_v37  ;;  %v95_v40 = vsub.s32 1, %v90_v37  ;;  %v306_v42 = vunpack.c.l.s4 %v502_v41  ;;  %s470_s2 = scalar_lea.vmem %s328_s12, 32  ;;  %p475_p3 = scmp.lt.s32.totalorder %s328_s12, %s328_s12 }
  0x34   :  { %266 = vmatpush1.bf16.msra.mxu0 %v389_v7  ;;  %p471_p2 = scmp.ne.s32.totalorder %s328_s12, %s470_s2  ;;  %p476_p4 = scmp.lt.s32.totalorder %s470_s2, %s470_s2 }
  0x35   :  { %267 = vmatprep.subr.bf16.mxu0 %v390_v8  ;;  %v92_v43 = vrot.slane %v87_v39, %v91_v38  ;;  %v96_v44 = vrot.slane %v87_v39, %v95_v40  ;;  %v307_v45 = vunpack.c.0.s8 %v306_v42 }
  0x36   :  { %p477_p5 = por %p476_p4, %p475_p3 }
  0x37   :  { %v310_v51 = vsub.s32 %v307_v45, %v90_v37 }
  0x38   :  { %268 = vmatpush1.bf16.msra.mxu0 %v392_v9  ;;  %p478_p6 = pnand %p477_p5, %p471_p2 }
  0x39   :  { %269 = vmatprep.subr.bf16.mxu0 %v393_v10 }
  0x3c   :  { %270 = vmatpush1.bf16.msra.mxu0 %v395_v11 }
  0x3d   :  { %271 = vmatprep.subr.bf16.mxu0 %v396_v12 }
  0x40   :  { %272 = vmatpush1.bf16.msra.mxu0 %v398_v15 }
  0x41   :  { %273 = vmatprep.subr.bf16.mxu0 %v399_v16 }
  0x44   :  { %274 = vmatpush1.bf16.msra.mxu0 %v401_v18 }
  0x45   :  { %275 = vmatprep.subr.bf16.mxu0 %v402_v19 }
  0x48   :  { %276 = vmatpush1.bf16.msra.mxu0 %v404_v20 }
  0x49   :  { %277 = vmatprep.subr.bf16.mxu0 %v405_v21 }
  0x4c   :  { %278 = vmatpush1.bf16.msra.mxu0 %v407_v22 }
  0x4d   :  { %279 = vmatprep.subr.bf16.mxu0 %v408_v23 }
  0x50   :  { %280 = vmatpush1.bf16.msra.mxu0 %v410_v24 }
  0x51   :  { %281 = vmatprep.subr.bf16.mxu0 %v411_v25 }
  0x54   :  { %282 = vmatpush1.bf16.msra.mxu0 %v413_v26 }
  0x55   :  { %283 = vmatprep.subr.bf16.mxu0 %v414_v27 }
  0x58   :  { %284 = vmatpush1.bf16.msra.mxu0 %v416_v28 }
  0x59   :  { %285 = vmatprep.subr.bf16.mxu0 %v417_v29 }
  0x5c   :  { %286 = vmatpush1.bf16.msra.mxu0 %v419_v30 }
  0x5d   :  { %287 = vmatprep.subr.bf16.mxu0 %v420_v31 }
  0x60   :  { %288 = vmatpush1.bf16.msra.mxu0 %v422_v32 }
  0x61   :  { %289 = vmatprep.subr.bf16.mxu0 %v423_v33 }
  0x64   :  { %290 = vmatpush1.bf16.msra.mxu0 %v425_v34 }
  0x67   :  { %292 = vmatmul.mubr.bf16.vlgmr.msra.gmra.mrb[0].mxu0 %v53_v35 }
 0x13a   :  { %v293_v46 = vpop.f32.mrb[0].mxu0 }
 0x13b   :  { %v294_v47 = vadd.f32 %v293_v46, %v92_v43  ;;  %v295_v48 = vpop.f32.mrb[1].mxu0 }
 0x13c   :  { %v296_v49 = vadd.f32 %v295_v48, %v96_v44  ;;  %v297_v50 = vpop.f32.mrb[2].mxu0 }
 0x13d   :  { %v298_v52 = vpop.f32.mrb[3].mxu0 }
 0x13e   :  { %v370_v53 = vpack.c.bf16 %v296_v49, %v294_v47 }
 0x140   :  { %v311_v54 = vrot.slane %v370_v53, %v310_v51 }
 0x142   :  { %371 = vst.sshfl [vmem:[#allocation7] sm:$0x5 pattern:$0x73625140] %v311_v54 }
 0x143   :  { %481 = shalt.err (!%p478_p6)
}
 0x144   :  { %s482_s15 = scalar_lea.hbm %s573_s3, 32 }
 0x145   :  { %p483_p7 = scmp.ne.s32.totalorder %s573_s3, %s482_s15  ;;  %p486_p8 = scmp.lt.u32.totalorder %s482_s15, %s573_s3 }
 0x147   :  { %p488_p9 = pnand %p486_p8, %p483_p7 }
 0x149   :  { %491 = shalt.err (!%p488_p9)
}
 0x14a   :  { %330 = dma.vmem_to_hbm [thread:$0]  %s328_s12, 32, %s573_s3, [#allocation4]  }
 0x14b   :  { %496 = dma.done.wait [#allocation4], 32  }
 0x14c   :  { %497 = vsyncadd [#allocation4], 4294967264 }
 0x14d   :  { %334 = vsyncpa [#allocation3], 1 }
 0x14e   :  { %335 = vsyncpa [#allocation6], 1 }
 0x14f   :  { %336 = vsyncpa [#allocation4], 1 }

</bundles_post_ra>
